<compile_context>
chip_gen: v7x
topology: tpu7x:2x2x1
jax: 0.10.0
libtpu: 0.0.40
codegen_flags: <defaults>
</compile_context>

<pallas_src>
import functools

import jax
import jax.numpy as jnp
from jax.experimental import pallas as pl
from jax.experimental.pallas import tpu as pltpu

C_HID = 16   # pre/post channels
C_GATE = 32  # filter/gating channels


def waveblock_kernel(*refs, dilation, t_total, t_block, halo):
    """One (batch, time-block) grid step; everything is channels-first (C, T)."""
    if halo:
        (x_ref, xn_ref, wpre_ref, bpre_ref, wfg_ref, bfg_ref,
         wpost_ref, bpost_ref, out_x_ref, out_z_ref) = refs
    else:
        (x_ref, wpre_ref, bpre_ref, wfg_ref, bfg_ref,
         wpost_ref, bpost_ref, out_x_ref, out_z_ref) = refs

    d = dilation
    cdt = wpre_ref.dtype                       # MXU input dtype (f32 or bf16)

    # ---- pre_process: 1x1 conv == (16, Cin) @ (Cin, TB) matmul, then ReLU ----
    y = jnp.dot(wpre_ref[...], x_ref[...],
                preferred_element_type=jnp.float32) + bpre_ref[...]
    y = jnp.maximum(y, 0.0)                    # (16, TB) f32

    # ---- dilated tap y[:, t + d]: static lane shift; the last d columns come
    #      from the next time block (halo) or are zeros (masked below anyway).
    if halo:
        yn = jnp.dot(wpre_ref[...], xn_ref[...],
                     preferred_element_type=jnp.float32) + bpre_ref[...]
        yn = jnp.maximum(yn, 0.0)              # next block's y
        tail = yn[:, :d]
    else:
        tail = jnp.zeros((C_HID, d), jnp.float32)
    y_shift = jnp.concatenate([y[:, d:], tail], axis=1)       # (16, TB)

    # ---- filter + gating fused into ONE matmul: (64, 32) @ (32, TB) ----------
    ycat = jnp.concatenate([y, y_shift], axis=0).astype(cdt)  # (32, TB)
    fg = jnp.dot(wfg_ref[...], ycat,
                 preferred_element_type=jnp.float32) + bfg_ref[...]  # (64, TB)

    # ---- F.pad(..., (0, d)): conv output is zero at global t >= T - d --------
    col = jax.lax.broadcasted_iota(jnp.int32, (1, t_block), 1)
    gpos = pl.program_id(1) * t_block + col
    fg = jnp.where(gpos < (t_total - d), fg, 0.0)

    # ---- gated activation + post_process (1x1 conv) + ReLU -------------------
    z = jnp.tanh(fg[:C_GATE, :]) * jax.nn.sigmoid(fg[C_GATE:, :])    # (32, TB)
    p = jnp.dot(wpost_ref[...], z.astype(cdt),
                preferred_element_type=jnp.float32) + bpost_ref[...]
    p = jnp.maximum(p, 0.0)                    # (16, TB)

    out_x_ref[...] = (y + p).astype(out_x_ref.dtype)
    out_z_ref[...] = p.astype(out_z_ref.dtype)


def waveblock_pallas(x_ncw, params, dilation, *, time_block=None,
                     compute_dtype=None):
    """x_ncw: (B, Cin, T) PyTorch NCW layout.  Returns (x_out, z_out) in NCW."""
    wpre, bpre, wf, bf, wg, bg, wpost, bpost = params
    B, Cin, T = x_ncw.shape
    d = int(dilation)
    if not (0 < d < T):
        raise ValueError("dilation must satisfy 0 < dilation < T")

    cdt = jnp.dtype(compute_dtype) if compute_dtype is not None else x_ncw.dtype

    # Weight prep (channels-first: out = W @ x, so no transposes are needed).
    wpre_cf = wpre[:, :, 0].astype(cdt)                               # (16, Cin)
    w_fg = jnp.concatenate(
        [jnp.concatenate([wf[:, :, 0], wf[:, :, 1]], axis=1),         # (32, 32)
         jnp.concatenate([wg[:, :, 0], wg[:, :, 1]], axis=1)],        # (32, 32)
        axis=0).astype(cdt)                                           # (64, 32)
    wpost_cf = wpost[:, :, 0].astype(cdt)                             # (16, 32)
    b_pre = bpre.reshape(C_HID, 1).astype(jnp.float32)
    b_fg = jnp.concatenate([bf, bg]).reshape(2 * C_GATE, 1).astype(jnp.float32)
    b_post = bpost.reshape(C_HID, 1).astype(jnp.float32)

    x_in = x_ncw.astype(cdt)

    # Time tiling: lane-dense blocks, bounded VMEM for long sequences.
    if time_block is not None:
        tb = int(time_block)
    else:
        tb = T
        for cand in (1024, 512, 256, 128):
            if T % cand == 0 and cand > d:
                tb = cand
                break
    if not (T % tb == 0 and tb > d and (tb == T or tb % 128 == 0)):
        tb = T                                  # fallback: whole row, one block
    nt = T // tb
    halo = nt > 1                               # only need a 2nd x view if tiled

    kernel = functools.partial(waveblock_kernel, dilation=d, t_total=T,
                               t_block=tb, halo=halo)

    def fixed(shape):
        return pl.BlockSpec(shape, lambda b, t, n=len(shape): (0,) * n)

    in_specs = [pl.BlockSpec((None, Cin, tb), lambda b, t: (b, 0, t))]
    args = [x_in]
    if halo:
        # Same array, shifted one time-block to the right (clamped at the end;
        # the clamped tail lands in the F.pad zero region so its data is unused).
        in_specs.append(pl.BlockSpec(
            (None, Cin, tb), lambda b, t: (b, 0, jnp.minimum(t + 1, nt - 1))))
        args.append(x_in)
    in_specs += [
        fixed((C_HID, Cin)), fixed((C_HID, 1)),                 # pre_process
        fixed((2 * C_GATE, 2 * C_HID)), fixed((2 * C_GATE, 1)), # fused filt+gate
        fixed((C_HID, C_GATE)), fixed((C_HID, 1)),              # post_process
    ]
    args += [wpre_cf, b_pre, w_fg, b_fg, wpost_cf, b_post]

    out_x, out_z = pl.pallas_call(
        kernel,
        grid=(B, nt),
        in_specs=in_specs,
        out_specs=[
            pl.BlockSpec((None, C_HID, tb), lambda b, t: (b, 0, t)),
            pl.BlockSpec((None, C_HID, tb), lambda b, t: (b, 0, t)),
        ],
        out_shape=[
            jax.ShapeDtypeStruct((B, C_HID, T), cdt),
            jax.ShapeDtypeStruct((B, C_HID, T), cdt),
        ],
        compiler_params=pltpu.CompilerParams(
            dimension_semantics=("parallel", "parallel")),
    )(*args)

    return out_x, out_z


def waveblock_reference(x, params, d):
    """Pure-JAX reference matching the PyTorch forward exactly (NCW layout)."""
    wpre, bpre, wf, bf, wg, bg, wpost, bpost = params
    T = x.shape[-1]
    y = jnp.einsum('oc,bct->bot', wpre[:, :, 0], x) + bpre[None, :, None]
    y = jnp.maximum(y, 0.0)
    f = (jnp.einsum('oc,bct->bot', wf[:, :, 0], y[:, :, :T - d])
         + jnp.einsum('oc,bct->bot', wf[:, :, 1], y[:, :, d:])
         + bf[None, :, None])
    g = (jnp.einsum('oc,bct->bot', wg[:, :, 0], y[:, :, :T - d])
         + jnp.einsum('oc,bct->bot', wg[:, :, 1], y[:, :, d:])
         + bg[None, :, None])
    f = jnp.pad(f, ((0, 0), (0, 0), (0, d)))
    g = jnp.pad(g, ((0, 0), (0, 0), (0, d)))
    z = jnp.tanh(f) * jax.nn.sigmoid(g)
    p = jnp.einsum('oc,bct->bot', wpost[:, :, 0], z) + bpost[None, :, None]
    p = jnp.maximum(p, 0.0)
    return y + p, p


if __name__ == "__main__":
    key = jax.random.PRNGKey(0)
    B = 2
    initial = False                       # WaveBlock(dilation_rate=d, initial=False)
    Cin = 1 if initial else C_HID

    keys = jax.random.split(key, 10)
    s = 0.2
    params = (
        jax.random.normal(keys[0], (C_HID, Cin, 1), jnp.float32) * s,    # pre_process.weight
        jax.random.normal(keys[1], (C_HID,), jnp.float32) * s,           # pre_process.bias
        jax.random.normal(keys[2], (C_GATE, C_HID, 2), jnp.float32) * s, # filter.weight
        jax.random.normal(keys[3], (C_GATE,), jnp.float32) * s,          # filter.bias
        jax.random.normal(keys[4], (C_GATE, C_HID, 2), jnp.float32) * s, # gating.weight
        jax.random.normal(keys[5], (C_GATE,), jnp.float32) * s,          # gating.bias
        jax.random.normal(keys[6], (C_HID, C_GATE, 1), jnp.float32) * s, # post_process.weight
        jax.random.normal(keys[7], (C_HID,), jnp.float32) * s,           # post_process.bias
    )

    # ---- test 1: tiled time axis (2 blocks, dilated tap crosses the boundary), f32
    T1, d1 = 256, 2
    x1 = jax.random.normal(keys[8], (B, Cin, T1), jnp.float32)           # PyTorch NCW
    ox1, oz1 = waveblock_pallas(x1, params, d1, time_block=128)
    jax.block_until_ready((ox1, oz1))
    rx1, rz1 = waveblock_reference(x1, params, d1)
    assert ox1.shape == (B, C_HID, T1) and oz1.shape == (B, C_HID, T1)
    assert jnp.allclose(ox1, rx1, atol=1e-5, rtol=1e-5)
    assert jnp.allclose(oz1, rz1, atol=1e-5, rtol=1e-5)

    # ---- test 2: small T not a multiple of 128 -> single-block fallback, f32
    T2, d2 = 24, 3
    x2 = jax.random.normal(keys[9], (B, Cin, T2), jnp.float32)
    ox2, oz2 = waveblock_pallas(x2, params, d2)
    jax.block_until_ready((ox2, oz2))
    rx2, rz2 = waveblock_reference(x2, params, d2)
    assert jnp.allclose(ox2, rx2, atol=1e-5, rtol=1e-5)
    assert jnp.allclose(oz2, rz2, atol=1e-5, rtol=1e-5)

    # ---- test 3: bf16 activation/weight streams (memory-bound win), loose tolerance
    ox3, oz3 = waveblock_pallas(x1, params, d1, time_block=128,
                                compute_dtype=jnp.bfloat16)
    jax.block_until_ready((ox3, oz3))
    assert jnp.allclose(ox3.astype(jnp.float32), rx1, atol=0.25, rtol=0.05)
    assert jnp.allclose(oz3.astype(jnp.float32), rz1, atol=0.25, rtol=0.05)

    print("KERNEL_OK")
</pallas_src>

<mosaic_0001>
module attributes {stable_mosaic.version = 11 : i64} {
  func.func @waveblock_kernel(%arg0: i32, %arg1: i32, %arg2: memref<1x16x128xf32, #tpu.memory_space<vmem>>, %arg3: memref<1x16x128xf32, #tpu.memory_space<vmem>>, %arg4: memref<16x16xf32, #tpu.memory_space<vmem>>, %arg5: memref<16x1xf32, #tpu.memory_space<vmem>>, %arg6: memref<64x32xf32, #tpu.memory_space<vmem>>, %arg7: memref<64x1xf32, #tpu.memory_space<vmem>>, %arg8: memref<16x32xf32, #tpu.memory_space<vmem>>, %arg9: memref<16x1xf32, #tpu.memory_space<vmem>>, %arg10: memref<1x16x128xf32, #tpu.memory_space<vmem>>, %arg11: memref<1x16x128xf32, #tpu.memory_space<vmem>>) attributes {dimension_semantics = [#tpu.dimension_semantics<parallel>, #tpu.dimension_semantics<parallel>], iteration_bounds = array<i64: 2, 2>, scalar_prefetch = 0 : i64, scratch_operands = 0 : i64, tpu.core_type = #tpu.core_type<tc>, window_params = [{transform_indices = @transform_0, window_bounds = array<i64: 1, 16, 128>}, {transform_indices = @transform_1, window_bounds = array<i64: 1, 16, 128>}, {pipeline_mode = #tpu.pipeline_mode<synchronous>, transform_indices = @transform_2, window_bounds = array<i64: 16, 16>}, {pipeline_mode = #tpu.pipeline_mode<synchronous>, transform_indices = @transform_3, window_bounds = array<i64: 16, 1>}, {pipeline_mode = #tpu.pipeline_mode<synchronous>, transform_indices = @transform_4, window_bounds = array<i64: 64, 32>}, {pipeline_mode = #tpu.pipeline_mode<synchronous>, transform_indices = @transform_5, window_bounds = array<i64: 64, 1>}, {pipeline_mode = #tpu.pipeline_mode<synchronous>, transform_indices = @transform_6, window_bounds = array<i64: 16, 32>}, {pipeline_mode = #tpu.pipeline_mode<synchronous>, transform_indices = @transform_7, window_bounds = array<i64: 16, 1>}, {transform_indices = @transform_8, window_bounds = array<i64: 1, 16, 128>}, {transform_indices = @transform_9, window_bounds = array<i64: 1, 16, 128>}]} {
    %c0 = arith.constant 0 : index
    %c0_0 = arith.constant 0 : index
    %0 = vector.load %arg4[%c0, %c0_0] : memref<16x16xf32, #tpu.memory_space<vmem>>, vector<16x16xf32>
    %c0_1 = arith.constant 0 : index
    %c0_2 = arith.constant 0 : index
    %c0_3 = arith.constant 0 : index
    %1 = vector.load %arg2[%c0_1, %c0_2, %c0_3] : memref<1x16x128xf32, #tpu.memory_space<vmem>>, vector<1x16x128xf32>
    %2 = vector.shape_cast %1 : vector<1x16x128xf32> to vector<16x128xf32>
    %cst = arith.constant dense<0.000000e+00> : vector<16x128xf32>
    %3 = tpu.matmul %0, %2, %cst {dimension_numbers = #tpu.dot_dimension_numbers<[1], [0], [0], [1], [0, 0, 1, 1], [], []>} : vector<16x16xf32>, vector<16x128xf32>, vector<16x128xf32> -> vector<16x128xf32>
    %c0_4 = arith.constant 0 : index
    %c0_5 = arith.constant 0 : index
    %4 = vector.load %arg5[%c0_4, %c0_5] : memref<16x1xf32, #tpu.memory_space<vmem>>, vector<16x1xf32>
    %5 = vector.broadcast %4 : vector<16x1xf32> to vector<16x128xf32>
    %6 = arith.addf %3, %5 : vector<16x128xf32>
    %cst_6 = arith.constant 0.000000e+00 : f32
    %7 = vector.broadcast %cst_6 : f32 to vector<16x128xf32>
    %8 = arith.maximumf %6, %7 : vector<16x128xf32>
    %c0_7 = arith.constant 0 : index
    %c0_8 = arith.constant 0 : index
    %9 = vector.load %arg4[%c0_7, %c0_8] : memref<16x16xf32, #tpu.memory_space<vmem>>, vector<16x16xf32>
    %c0_9 = arith.constant 0 : index
    %c0_10 = arith.constant 0 : index
    %c0_11 = arith.constant 0 : index
    %10 = vector.load %arg3[%c0_9, %c0_10, %c0_11] : memref<1x16x128xf32, #tpu.memory_space<vmem>>, vector<1x16x128xf32>
    %11 = vector.shape_cast %10 : vector<1x16x128xf32> to vector<16x128xf32>
    %cst_12 = arith.constant dense<0.000000e+00> : vector<16x128xf32>
    %12 = tpu.matmul %9, %11, %cst_12 {dimension_numbers = #tpu.dot_dimension_numbers<[1], [0], [0], [1], [0, 0, 1, 1], [], []>} : vector<16x16xf32>, vector<16x128xf32>, vector<16x128xf32> -> vector<16x128xf32>
    %c0_13 = arith.constant 0 : index
    %c0_14 = arith.constant 0 : index
    %13 = vector.load %arg5[%c0_13, %c0_14] : memref<16x1xf32, #tpu.memory_space<vmem>>, vector<16x1xf32>
    %14 = vector.broadcast %13 : vector<16x1xf32> to vector<16x128xf32>
    %15 = arith.addf %12, %14 : vector<16x128xf32>
    %cst_15 = arith.constant 0.000000e+00 : f32
    %16 = vector.broadcast %cst_15 : f32 to vector<16x128xf32>
    %17 = arith.maximumf %15, %16 : vector<16x128xf32>
    %18 = vector.extract_strided_slice %17 {offsets = [0, 0], sizes = [16, 2], strides = [1, 1]} : vector<16x128xf32> to vector<16x2xf32>
    %19 = vector.extract_strided_slice %8 {offsets = [0, 2], sizes = [16, 126], strides = [1, 1]} : vector<16x128xf32> to vector<16x126xf32>
    %20 = tpu.concatenate %19, %18 in 1 : vector<16x126xf32>, vector<16x2xf32> -> vector<16x128xf32>
    %21 = tpu.concatenate %8, %20 in 0 : vector<16x128xf32>, vector<16x128xf32> -> vector<32x128xf32>
    %c0_16 = arith.constant 0 : index
    %c0_17 = arith.constant 0 : index
    %22 = vector.load %arg6[%c0_16, %c0_17] : memref<64x32xf32, #tpu.memory_space<vmem>>, vector<64x32xf32>
    %cst_18 = arith.constant dense<0.000000e+00> : vector<64x128xf32>
    %23 = tpu.matmul %22, %21, %cst_18 {dimension_numbers = #tpu.dot_dimension_numbers<[1], [0], [0], [1], [0, 0, 1, 1], [], []>} : vector<64x32xf32>, vector<32x128xf32>, vector<64x128xf32> -> vector<64x128xf32>
    %c0_19 = arith.constant 0 : index
    %c0_20 = arith.constant 0 : index
    %24 = vector.load %arg7[%c0_19, %c0_20] : memref<64x1xf32, #tpu.memory_space<vmem>>, vector<64x1xf32>
    %25 = vector.broadcast %24 : vector<64x1xf32> to vector<64x128xf32>
    %26 = arith.addf %23, %25 : vector<64x128xf32>
    %27 = tpu.iota {dimensions = array<i32: 1>} : vector<1x128xi32>
    %c128_i32 = arith.constant 128 : i32
    %28 = arith.muli %arg1, %c128_i32 : i32
    %29 = vector.broadcast %28 : i32 to vector<1x128xi32>
    %30 = arith.addi %29, %27 : vector<1x128xi32>
    %c254_i32 = arith.constant 254 : i32
    %31 = vector.broadcast %c254_i32 : i32 to vector<1x128xi32>
    %32 = arith.cmpi slt, %30, %31 : vector<1x128xi32>
    %cst_21 = arith.constant 0.000000e+00 : f32
    %33 = vector.shape_cast %32 : vector<1x128xi1> to vector<1x128xi1>
    %34 = vector.broadcast %33 : vector<1x128xi1> to vector<64x128xi1>
    %35 = vector.broadcast %cst_21 : f32 to vector<64x128xf32>
    %36 = arith.select %34, %26, %35 : vector<64x128xi1>, vector<64x128xf32>
    %37 = vector.extract_strided_slice %36 {offsets = [0, 0], sizes = [32, 128], strides = [1, 1]} : vector<64x128xf32> to vector<32x128xf32>
    %38 = math.tanh %37 : vector<32x128xf32>
    %39 = vector.extract_strided_slice %36 {offsets = [32, 0], sizes = [32, 128], strides = [1, 1]} : vector<64x128xf32> to vector<32x128xf32>
    %40 = arith.negf %39 : vector<32x128xf32>
    %41 = math.exp %40 : vector<32x128xf32>
    %cst_22 = arith.constant 1.000000e+00 : f32
    %42 = vector.broadcast %cst_22 : f32 to vector<32x128xf32>
    %43 = arith.addf %42, %41 : vector<32x128xf32>
    %44 = arith.divf %42, %43 : vector<32x128xf32>
    %45 = arith.mulf %38, %44 : vector<32x128xf32>
    %c0_23 = arith.constant 0 : index
    %c0_24 = arith.constant 0 : index
    %46 = vector.load %arg8[%c0_23, %c0_24] : memref<16x32xf32, #tpu.memory_space<vmem>>, vector<16x32xf32>
    %cst_25 = arith.constant dense<0.000000e+00> : vector<16x128xf32>
    %47 = tpu.matmul %46, %45, %cst_25 {dimension_numbers = #tpu.dot_dimension_numbers<[1], [0], [0], [1], [0, 0, 1, 1], [], []>} : vector<16x32xf32>, vector<32x128xf32>, vector<16x128xf32> -> vector<16x128xf32>
    %c0_26 = arith.constant 0 : index
    %c0_27 = arith.constant 0 : index
    %48 = vector.load %arg9[%c0_26, %c0_27] : memref<16x1xf32, #tpu.memory_space<vmem>>, vector<16x1xf32>
    %49 = vector.broadcast %48 : vector<16x1xf32> to vector<16x128xf32>
    %50 = arith.addf %47, %49 : vector<16x128xf32>
    %cst_28 = arith.constant 0.000000e+00 : f32
    %51 = vector.broadcast %cst_28 : f32 to vector<16x128xf32>
    %52 = arith.maximumf %50, %51 : vector<16x128xf32>
    %53 = arith.addf %8, %52 : vector<16x128xf32>
    %c0_29 = arith.constant 0 : index
    %c0_30 = arith.constant 0 : index
    %c0_31 = arith.constant 0 : index
    %54 = vector.load %arg10[%c0_29, %c0_30, %c0_31] : memref<1x16x128xf32, #tpu.memory_space<vmem>>, vector<1x16x128xf32>
    %55 = vector.shape_cast %54 : vector<1x16x128xf32> to vector<16x128xf32>
    %56 = vector.shape_cast %53 : vector<16x128xf32> to vector<1x16x128xf32>
    tpu.vector_store %arg10[%c0_29, %c0_30, %c0_31], %56 {strides = array<i32>} : memref<1x16x128xf32, #tpu.memory_space<vmem>>, vector<1x16x128xf32>,
    %c0_32 = arith.constant 0 : index
    %c0_33 = arith.constant 0 : index
    %c0_34 = arith.constant 0 : index
    %57 = vector.load %arg11[%c0_32, %c0_33, %c0_34] : memref<1x16x128xf32, #tpu.memory_space<vmem>>, vector<1x16x128xf32>
    %58 = vector.shape_cast %57 : vector<1x16x128xf32> to vector<16x128xf32>
    %59 = vector.shape_cast %52 : vector<16x128xf32> to vector<1x16x128xf32>
    tpu.vector_store %arg11[%c0_32, %c0_33, %c0_34], %59 {strides = array<i32>} : memref<1x16x128xf32, #tpu.memory_space<vmem>>, vector<1x16x128xf32>,
    return
  }
  func.func @transform_0(%arg0: i32, %arg1: i32) -> (i32, i32, i32) {
    %c0_i32 = arith.constant 0 : i32
    %c0_i32_0 = arith.constant 0 : i32
    return %arg0, %c0_i32, %arg1 : i32, i32, i32
  }
  func.func @transform_1(%arg0: i32, %arg1: i32) -> (i32, i32, i32) {
    %c1_i32 = arith.constant 1 : i32
    %0 = arith.addi %arg1, %c1_i32 : i32
    %c1_i32_0 = arith.constant 1 : i32
    %1 = arith.minsi %0, %c1_i32_0 : i32
    %c0_i32 = arith.constant 0 : i32
    %c0_i32_1 = arith.constant 0 : i32
    return %arg0, %c0_i32, %1 : i32, i32, i32
  }
  func.func @transform_2(%arg0: i32, %arg1: i32) -> (i32, i32) {
    %c0_i32 = arith.constant 0 : i32
    %c0_i32_0 = arith.constant 0 : i32
    %c0_i32_1 = arith.constant 0 : i32
    return %c0_i32, %c0_i32_0 : i32, i32
  }
  func.func @transform_3(%arg0: i32, %arg1: i32) -> (i32, i32) {
    %c0_i32 = arith.constant 0 : i32
    %c0_i32_0 = arith.constant 0 : i32
    %c0_i32_1 = arith.constant 0 : i32
    return %c0_i32, %c0_i32_0 : i32, i32
  }
  func.func @transform_4(%arg0: i32, %arg1: i32) -> (i32, i32) {
    %c0_i32 = arith.constant 0 : i32
    %c0_i32_0 = arith.constant 0 : i32
    %c0_i32_1 = arith.constant 0 : i32
    return %c0_i32, %c0_i32_0 : i32, i32
  }
  func.func @transform_5(%arg0: i32, %arg1: i32) -> (i32, i32) {
    %c0_i32 = arith.constant 0 : i32
    %c0_i32_0 = arith.constant 0 : i32
    %c0_i32_1 = arith.constant 0 : i32
    return %c0_i32, %c0_i32_0 : i32, i32
  }
  func.func @transform_6(%arg0: i32, %arg1: i32) -> (i32, i32) {
    %c0_i32 = arith.constant 0 : i32
    %c0_i32_0 = arith.constant 0 : i32
    %c0_i32_1 = arith.constant 0 : i32
    return %c0_i32, %c0_i32_0 : i32, i32
  }
  func.func @transform_7(%arg0: i32, %arg1: i32) -> (i32, i32) {
    %c0_i32 = arith.constant 0 : i32
    %c0_i32_0 = arith.constant 0 : i32
    %c0_i32_1 = arith.constant 0 : i32
    return %c0_i32, %c0_i32_0 : i32, i32
  }
  func.func @transform_8(%arg0: i32, %arg1: i32) -> (i32, i32, i32) {
    %c0_i32 = arith.constant 0 : i32
    %c0_i32_0 = arith.constant 0 : i32
    return %arg0, %c0_i32, %arg1 : i32, i32, i32
  }
  func.func @transform_9(%arg0: i32, %arg1: i32) -> (i32, i32, i32) {
    %c0_i32 = arith.constant 0 : i32
    %c0_i32_0 = arith.constant 0 : i32
    return %arg0, %c0_i32, %arg1 : i32, i32, i32
  }
}

</mosaic_0001>

<bundles_post_ra>
// kernel: tpu_custom_call.1
= control target key start
LH: loop header
LB: loop body
LE: loop exit
PB: predicated region body
PF: predicated region fallthrough
CT: control target
= control target key end

     0   :  { %s2003_s0 = inlined_call_operand.vmem [shape: f32[2,16,256], index: 0, kind: input, shape index: {}]   ;;  %s2004_s1 = inlined_call_operand.vmem [shape: f32[2,16,256], index: 1, kind: input, shape index: {}]   ;;  %s2005_s2 = inlined_call_operand.vmem [shape: f32[16,16], index: 2, kind: input, shape index: {}]   ;;  %s2006_s3 = inlined_call_operand.vmem [shape: f32[16,1], index: 3, kind: input, shape index: {}]   ;;  %s2007_s4 = inlined_call_operand.vmem [shape: f32[64,32], index: 4, kind: input, shape index: {}]   ;;  %s2008_s5 = inlined_call_operand.vmem [shape: f32[64,1], index: 5, kind: input, shape index: {}]   ;;  %s2009_s6 = inlined_call_operand.vmem [shape: f32[16,32], index: 6, kind: input, shape index: {}]   ;;  %s2010_s7 = inlined_call_operand.vmem [shape: f32[16,1], index: 7, kind: input, shape index: {}]   ;;  %s2011_s8 = inlined_call_operand.hbm [shape: f32[2,16,256], index: 8, kind: output, shape index: {0}]   ;;  %s2012_s9 = inlined_call_operand.hbm [shape: f32[2,16,256], index: 9, kind: output, shape index: {1}]  }
   0x1   :  { %2019 = sst [smem:[#allocation17_spill]] %s2011_s8 }
   0x2   :  { %15 = vsyncpa [#allocation5], 0 }
   0x3   :  { %17 = vsyncpa [#allocation5 + $0x1], 0 }
   0x4   :  { %18 = vsyncpa [#allocation7], 0 }
   0x5   :  { %20 = vsyncpa [#allocation7 + $0x1], 0  ;;  %s1657_s30 = smov 0   ;;  %s1659_s10 = smov 0  }
   0x6   :  { %s1661_s11 = smov 0   ;;  %s1663_s12 = smov 0  }
   0x7   :  { %s1665_s13 = smov 0   ;;  %s1667_s14 = smov 0  }
   0x8   :  { %s1669_s15 = smov 0   ;;  %s1671_s16 = smov 0  }
   0x9   :  { %s1673_s17 = smov 0   ;;  %s1675_s18 = smov 0  }
   0xa LB: > { %2020 = sst [smem:[#allocation10_spill]] %s1578_s13  ;;  %s1183_s19 = sadd.s32 4294967295, %s1598_s18   ;;  %s1598_s18 = sphi %s1675_s18, %s26_s18   ;;  %s1594_s17 = sphi %s1673_s17, %s2044_s17   ;;  %s1590_s16 = sphi %s1671_s16, %s2037_s16   ;;  %s1586_s15 = sphi %s1669_s15, %s2043_s15   ;;  %s1582_s14 = sphi %s1667_s14, %s2036_s14   ;;  %s1578_s13 = sphi %s1665_s13, %s2035_s13   ;;  %s1574_s12 = sphi %s1663_s12, %s2042_s12   ;;  %s1570_s11 = sphi %s1661_s11, %s2041_s11   ;;  %s1566_s10 = sphi %s1659_s10, %s2040_s10   ;;  %s1562_s30 = sphi %s1657_s30, %s2039_s30  }
   0xb   : > { %2021 = sst [smem:[#allocation11_spill]] %s1590_s16  ;;  %s1184_s20 = sadd.s32 4294967294, %s1598_s18  }
   0xc   : > { %s35_s21 = sadd.s32 1, %s1590_s16  ;;  %s38_s22 = sadd.s32 1, %s1594_s17 }
   0xd   : > { %p36_p0 = scmp.ge.s32.totalorder %s35_s21, 2  ;;  %s47_s23 = sadd.s32 1, %s1578_s13 }
   0xe   : > { %p54_p1 = scmp.ne.s32.totalorder %s1578_s13, %s1574_s12  ;;  %p55_p2 = scmp.eq.s32.totalorder %s1598_s18, 0 }
   0xf   : > { %s2046_s21 = smov (%p36_p0, %s35_s21), 0  ;;  %s2048_s22 = smov (!%p36_p0, %s38_s22), %s1594_s17 }
  0x10   : > { %2022 = sst [smem:[#allocation12_spill]] %s2046_s21  ;;  %s43_s24 = ssub.s32 %s1590_s16, %s2046_s21 }
  0x11   : > { %p1725_p3 = por %p55_p2, %p54_p1  ;;  %p40_p4 = scmp.ge.s32.totalorder %s2048_s22, 2 }
  0x12   : > { %s81_s26 = sadd.s32 1, %s1570_s11  ;;  %p88_p5 = scmp.ne.s32.totalorder %s1570_s11, %s1566_s10 }
  0x13   : > { %s2050_s22 = smov (%p40_p4, %s2048_s22), 0  ;;  %p246_p7 = scmp.eq.s32.totalorder %s1183_s19, 3 }
  0x14   : > { %2024 = sst [smem:[#allocation13_spill]] %s2050_s22  ;;  %s42_s27 = ssub.s32 %s1594_s17, %s2050_s22 }
  0x15   : > { %s44_s28 = sor.u32 %s43_s24, %s42_s27  ;;  %p1741_p8 = por %p88_p5, %p55_p2 }
  0x16   : > { %p45_p6 = scmp.eq.s32.totalorder %s44_s28, 0  ;;  %p1748_p9 = por %p246_p7, %p54_p1 }
  0x17   : > { %p79_p10 = scmp.eq.s32.totalorder %s42_s27, 0  ;;  %p251_p11 = scmp.ne.s32.totalorder %s1574_s12, %s1562_s30 }
  0x18   : > { %s1737_s29 = scalar_select %p45_p6, %s1578_s13, %s47_s23  }
  0x19   : > { %p252_p12 = scmp.eq.s32.totalorder %s1184_s20, 3  ;;  %p1186_p0 = scmp.ge.s32.totalorder %s1598_s18, 4 }
  0x1a   : > { %2025 = sst [smem:[#allocation14_spill]] %s1737_s29 }
  0x1b   : > { %s1755_s22 = scalar_select %p79_p10, %s1570_s11, %s81_s26  }
  0x1c   : > { %p1757_p13 = por %p252_p12, %p251_p11  ;;  %314 = sbr.rel (%p1186_p0) target bundleno = 49 (0x31), region = 40 }
  0x1d   : > { %2028 = sst [smem:[#allocation15_spill]] %s1755_s22 }
  0x1e   : > { %s2029_s24 = scalar_select %p1757_p13, 1, 0 }
  0x20   : > { %2030 = sst [smem:[#allocation16_spill]] %s2029_s24 }
  0x23   : > { %317 = sbr.rel (!%p1725_p3) target bundleno = 42 (0x2a), region = 44  ;;  %s319_s19 = sand.u32 (%p1725_p3), 1, %s1578_s13  }
  0x24   : > { %s1188_s23 = sshll.u32 (%p1725_p3), %s1594_s17, 2  ;;  %s1187_s27 = sshll.u32 (%p1725_p3), %s319_s19, 4 }
  0x25   : > { %s323_s28 = sadd.s32 (%p1725_p3), %s1590_s16, %s1188_s23  ;;  %s321_s24 = scalar_lea.vmem (%p1725_p3), [#allocation2], %s1187_s27 }
  0x26   : > { %s1189_s20 = sshll.u32 (%p1725_p3), %s323_s28, 3 }
  0x27   : > { %s325_s22 = scalar_lea.vmem (%p1725_p3), %s2003_s0, %s1189_s20 }
  0x28   : > { %v355_v0 = vld [vmem:[%s325_s22] sm:$0xff] (%p1725_p3)  ;;  %v357_v1 = vld [vmem:[%s325_s22 + $0x10] sm:$0xff] (%p1725_p3) }
  0x29   : > { %356 = vst [vmem:[%s321_s24] sm:$0xff] (%p1725_p3), %v355_v0  ;;  %358 = vst [vmem:[%s321_s24 + $0x8] sm:$0xff] (%p1725_p3), %v357_v1 }
  0x2a PF: > { %364 = sbr.rel (!%p1741_p8) target bundleno = 49 (0x31), region = 82  ;;  %s366_s25 = sand.u32 (%p1741_p8), 1, %s1570_s11  }
  0x2b   : > { %s1190_s13 = sshll.u32 (%p1741_p8), %s366_s25, 4  ;;  %s1559_s19 = sshll.u32 (%p1741_p8), %s1594_s17, 5 }
  0x2c   : > { %s1558_s23 = sadd.s32 (%p1741_p8), 8, %s1559_s19  ;;  %s368_s22 = scalar_lea.vmem (%p1741_p8), [#allocation3], %s1190_s13 }
  0x2d   : > { %s375_s29 = scalar_lea.vmem (%p1741_p8), %s2004_s1, %s1558_s23 }
  0x2e   : > { %v405_v2 = vld [vmem:[%s375_s29] sm:$0xff] (%p1741_p8)  ;;  %v407_v3 = vld [vmem:[%s375_s29 + $0x10] sm:$0xff] (%p1741_p8) }
  0x2f   : > { %406 = vst [vmem:[%s368_s22] sm:$0xff] (%p1741_p8), %v405_v2  ;;  %408 = vst [vmem:[%s368_s22 + $0x8] sm:$0xff] (%p1741_p8), %v407_v3 }
  0x31 PF: > { %p1193_p1 = scmp.ge.s32.totalorder %s1598_s18, 1  ;;  %p413_p2 = scmp.lt.s32.totalorder %s1598_s18, 5 }
  0x33   : > { %p414_p3 = pnand %p1193_p1, %p413_p2 }
  0x34   : > { %s1780_s21 = sand.u32 (!%p414_p3), 1, %s1574_s12   ;;  %v474_v4 = vld [vmem:[%s2005_s2] sm:$0xff] (!%p414_p3)  ;;  %vm490_vm0 = vcmask (!%p414_p3), 130048   ;;  %s427_s13 = sand.u32 (!%p414_p3), 1, %s1566_s10   ;;  %v1600_v5 = vmov (!%p414_p3), 0   ;;  %v479_v9 = vld [vmem:[%s2006_s3 + $0x8] sm:$0xff] (!%p414_p3)  ;;  %v858_v60 = vlaneseq (!%p414_p3) }
  0x35   : > { %417 = sbr.rel (%p414_p3) target bundleno = 927 (0x39f), region = 120  ;;  %s1787_s27 = sshll.u32 (!%p414_p3), %s1780_s21, 4  ;;  %1255 = vmatprep.mubr.msk.f32.mxu1 (!%p414_p3), %vm490_vm0, %v474_v4  ;;  %1417 = vset.pattern.permute.xlu0 (!%p414_p3), %v1600_v5  ;;  %v478_v6 = vld [vmem:[%s2006_s3] sm:$0xff] (!%p414_p3)  ;;  %v475_v14 = vld [vmem:[%s2005_s2 + $0x8] sm:$0xff] (!%p414_p3)  ;;  %v686_v16 = vld [vmem:[%s2008_s5 + $0x30] sm:$0xff] (!%p414_p3)  ;;  %vm728_vm1 = vcmask (!%p414_p3), 261120  }
  0x36   : > { %482 = vperm.xlu0 (!%p414_p3), %1417, %v478_v6   ;;  %1428 = vset.pattern.permute.xlu1 (!%p414_p3), %v1600_v5  ;;  %s422_s25 = scalar_lea.vmem (!%p414_p3), [#allocation2], %s1787_s27  ;;  %s1195_s19 = sshll.u32 (!%p414_p3), %s427_s13, 4  ;;  %v684_v15 = vld [vmem:[%s2008_s5 + $0x20] sm:$0xff] (!%p414_p3)  ;;  %v682_v18 = vld [vmem:[%s2008_s5 + $0x10] sm:$0xff] (!%p414_p3)  ;;  %v685_v38 = vld [vmem:[%s2008_s5 + $0x28] sm:$0xff] (!%p414_p3)  ;;  %vm669_vm2 = vcmask (!%p414_p3), 1031168  }
  0x37   : > { %v476_v7 = vld [vmem:[%s422_s25] sm:$0xff] (!%p414_p3)  ;;  %v477_v8 = vld [vmem:[%s422_s25 + $0x8] sm:$0xff] (!%p414_p3)  ;;  %s429_s10 = scalar_lea.vmem (!%p414_p3), [#allocation3], %s1195_s19  ;;  %s1601_s24 = smov (!%p414_p3), 126   ;;  %v859_v0 = vand.u32 (!%p414_p3), 127, %v858_v60 }
  0x38   : > { %v1296_v10 = vpack.c.bf16 (!%p414_p3), %v477_v8, %v476_v7  ;;  %v574_v11 = vld [vmem:[%s429_s10] sm:$0xff] (!%p414_p3)  ;;  %v575_v12 = vld [vmem:[%s429_s10 + $0x8] sm:$0xff] (!%p414_p3)  ;;  %s1210_s20 = sshll.u32 (!%p414_p3), %s1582_s14, 7  ;;  %s1219_s19 = sshll.u32 (!%p414_p3), %s1586_s15, 2 }
  0x39   : > { %v1300_v13 = vpack.c.bf16 (!%p414_p3), %v575_v12, %v574_v11  ;;  %v680_v17 = vld [vmem:[%s2008_s5] sm:$0xff] (!%p414_p3)  ;;  %v687_v39 = vld [vmem:[%s2008_s5 + $0x38] sm:$0xff] (!%p414_p3)  ;;  %v681_v40 = vld [vmem:[%s2008_s5 + $0x8] sm:$0xff] (!%p414_p3)  ;;  %v861_v1 = vstv (!%p414_p3), %s1210_s20  ;;  %s1026_s23 = sadd.s32 (!%p414_p3), %s1582_s14, %s1219_s19  ;;  %s470_s28 = scalar_lea.vmem (!%p414_p3), [#allocation6], %s1787_s27 }
  0x3a   : > { %1297 = vmatprep.subr.bf16.mxu1 (!%p414_p3), %v1296_v10  ;;  %487 = vperm.xlu0 (!%p414_p3), %1417, %v479_v9   ;;  %v908_v19 = vld [vmem:[%s2010_s7] sm:$0xff] (!%p414_p3)  ;;  %v683_v41 = vld [vmem:[%s2008_s5 + $0x18] sm:$0xff] (!%p414_p3)  ;;  %v909_v42 = vld [vmem:[%s2010_s7 + $0x8] sm:$0xff] (!%p414_p3)  ;;  %v862_v5 = vadd.s32 (!%p414_p3), %v861_v1, %v859_v0  ;;  %s1046_s10 = sshll.u32 (!%p414_p3), %s470_s28, 4  ;;  %s1220_s29 = sshll.u32 (!%p414_p3), %s1026_s23, 7  ;;  %s1897_s10 = int_to_ptr.vmem [resolvable:$true] %s1046_s10 }
  0x3b   : > { %1299 = vmatpush3.bf16.msra.mxu1 (!%p414_p3), %v1296_v10  ;;  %v672_v31 = vld [vmem:[%s2007_s4] sm:$0xff] (!%p414_p3)  ;;  %v673_v52 = vld [vmem:[%s2007_s4 + $0x8] sm:$0xff] (!%p414_p3)  ;;  %v674_v53 = vld [vmem:[%s2007_s4 + $0x10] sm:$0xff] (!%p414_p3)  ;;  %s1894_s22 = scalar_lea.vmem (!%p414_p3), [#allocation4], %s1787_s27  ;;  %s1902_s16 = scalar_lea.hbm (!%p414_p3), %s2012_s9, %s1220_s29 }
  0x3c   : > { %1301 = vmatprep.subr.bf16.mxu1 %v1300_v13  ;;  %1273 = vmatprep.mubr.msk.f32.mxu0 %vm728_vm1, %v672_v31  ;;  %v675_v54 = vld [vmem:[%s2007_s4 + $0x18] sm:$0xff]  ;;  %v676_v55 = vld [vmem:[%s2007_s4 + $0x20] sm:$0xff]  ;;  %v677_v56 = vld [vmem:[%s2007_s4 + $0x28] sm:$0xff]  ;;  %vm863_vm3 = vcmp.lt.s32.totalorder %v862_v5, 254  ;;  %s2031_s20 = sld [smem:[#allocation17_spill]]  ;;  %s1015_s25 = scalar_lea.sflag [#allocation7], %s1780_s21 }
  0x3d   : > { %v678_v57 = vld [vmem:[%s2007_s4 + $0x30] sm:$0xff]  ;;  %v679_v58 = vld [vmem:[%s2007_s4 + $0x38] sm:$0xff]  ;;  %v906_v59 = vld [vmem:[%s2009_s6] sm:$0xff]  ;;  %s1453_s19 = scalar_lea.vmem %s1897_s10, 256  ;;  %s1602_s23 = smov [#allocation6]  }
  0x3e   : > { %1256 = vmatmul.mubr.msk.f32.vlgmr.msra.gmra.mrb[0].mxu1 %vm490_vm0, %v475_v14  ;;  %710 = vperm.xlu0 %1417, %v684_v15   ;;  %v907_v60 = vld [vmem:[%s2009_s6 + $0x8] sm:$0xff]  ;;  %p1454_p4 = scmp.ne.s32.totalorder %s1897_s10, %s1453_s19  ;;  %s1457_s14 = sshll.u32 %s1602_s23, 4  ;;  %s1458_s14 = int_to_ptr.vmem [resolvable:$false] %s1457_s14 }
  0x3f   : > { %1303 = vmatpush3.bf16.msra.mxu1 %v1300_v13  ;;  %1262 = vmatprep.mubr.msk.f32.mxu1 %vm490_vm0, %v474_v4  ;;  %s1459_s15 = scalar_lea.vmem %s1458_s14, 512  ;;  %p1460_p7 = scmp.lt.s32.totalorder %s1897_s10, %s1458_s14 }
  0x40   : > { %p1455_p5 = pnand %p1454_p4, %p1748_p9  ;;  %p1461_p8 = scmp.lt.s32.totalorder %s1459_s15, %s1453_s19 }
  0x42   : > { %1263 = vmatmul.mubr.msk.f32.vlgmr.msra.gmra.mrb[2].mxu1 %vm490_vm0, %v475_v14  ;;  %720 = vperm.xlu0 %1417, %v686_v16   ;;  %s1911_s26 = scalar_lea.hbm %s2031_s20, %s1220_s29  ;;  %p1456_p6 = pneg %p1455_p5 }
  0x43   : > { %1293 = vmatprep.mubr.msk.f32.mxu1 %vm728_vm1, %v906_v59  ;;  %p1462_p10 = por %p1461_p8, %p1460_p7 }
  0x45   : > { %p1463_p11 = pnand %p1462_p10, %p1456_p6 }
  0x46   : > { %690 = vperm.xlu0 %1417, %v680_v17  }
  0x4a   : > { %700 = vperm.xlu0 %1417, %v682_v18  }
  0x4e   : > { %912 = vperm.xlu0 %1417, %v908_v19  }
  0xb5   : > { %v483_v20 = vpop.permute.xlu0 %482 }
  0xb9   : > { %v488_v21 = vpop.permute.xlu0 %487 }
  0xbd   : > { %v711_v2 = vpop.permute.xlu0 %710 }
  0xc1   : > { %v721_v10 = vpop.permute.xlu0 %720 }
 0x111   : > { %v1257_v22 = vpop.f32.mrb[0].mxu1 }
 0x112   : > { %v569_v23 = vadd.f32 %v1257_v22, %v488_v21  ;;  %v563_v24 = vpop.f32.mrb[1].mxu1  ;;  %v691_v22 = vpop.permute.xlu0 %690 }
 0x113   : > { %v564_v25 = vadd.f32 %v563_v24, %v483_v20 }
 0x114   : > { %v1818_v26 = vmax.f32 %v569_v23, 0.0 }
 0x115   : > { %v1820_v27 = vmax.f32 %v564_v25, 0.0  ;;  %v1264_v28 = vpop.f32.mrb[2].mxu1 }
 0x116   : > { %v648_v29 = vadd.f32 %v1264_v28, %v488_v21  ;;  %v642_v30 = vpop.f32.mrb[3].mxu1  ;;  %v701_v31 = vpop.permute.xlu0 %700 }
 0x117   : > { %v643_v32 = vadd.f32 %v642_v30, %v483_v20  ;;  %v1418_v33 = vpack.i.bf16 %v1818_v26, %v1820_v27  ;;  %v1304_v34 = vpack.c.bf16 %v1818_v26, %v1820_v27 }
 0x118   : > { %v652_v35 = vmax.f32 %v648_v29, 0.0 }
 0x119   : > { %v651_v36 = vmax.f32 %v643_v32, 0.0  ;;  %1419 = vrot.lane.b32.xlu1 %v1418_v33, %s1601_s24  ;;  %1305 = vmatprep.subr.bf16.mxu0 %v1304_v34 }
 0x11a   : > { %1307 = vmatpush3.bf16.msra.mxu0 %v1304_v34 }
 0x11b   : > { %v1423_v37 = vpack.i.bf16 %v652_v35, %v651_v36 }
 0x11d   : > { %1424 = vrot.lane.b32.xlu1 %v1423_v37, %s1601_s24  ;;  %s1029_s24 = sshll.u32 %s1894_s22, 4  ;;  %s1905_s24 = int_to_ptr.vmem [resolvable:$true] %s1029_s24 }
 0x121   : > { %715 = vperm.xlu1 %1428, %v685_v38  }
 0x125   : > { %725 = vperm.xlu1 %1428, %v687_v39  }
 0x129   : > { %695 = vperm.xlu1 %1428, %v681_v40  }
 0x12d   : > { %705 = vperm.xlu1 %1428, %v683_v41  }
 0x131   : > { %917 = vperm.xlu1 %1428, %v909_v42  }
 0x18b   : > { %v1420_v43 = vpop.permute.xlu1 %1419 }
 0x18c   : > { %v1422_v45 = vunpack.i.h.bf16 %v1420_v43  ;;  %v1421_v46 = vunpack.i.l.bf16 %v1420_v43 }
 0x18f   : > { %v1425_v44 = vpop.permute.xlu1 %1424 }
 0x190   : > { %v1427_v47 = vunpack.i.h.bf16 %v1425_v44  ;;  %v1426_v48 = vunpack.i.l.bf16 %v1425_v44 }
 0x192   : > { %v670_v49 = vsel %vm669_vm2, %v1421_v46, %v1426_v48  ;;  %v671_v50 = vsel %vm669_vm2, %v1422_v45, %v1427_v47 }
 0x193   : > { %v1308_v51 = vpack.c.bf16 %v671_v50, %v670_v49 }
 0x195   : > { %1309 = vmatprep.subr.bf16.mxu0 %v1308_v51 }
 0x196   : > { %1311 = vmatpush3.bf16.msra.mxu0 %v1308_v51 }
 0x199   : > { %1274 = vmatmul.mubr.msk.f32.vlgmr.msra.gmra.mrb[0].mxu0 %vm728_vm1, %v673_v52 }
 0x19a   : > { %1276 = vmatprep.mubr.msk.f32.mxu0 %vm728_vm1, %v674_v53 }
 0x19d   : > { %1277 = vmatmul.mubr.msk.f32.gmra.mrb[2].mxu0 %vm728_vm1, %v675_v54 }
 0x19e   : > { %1279 = vmatprep.mubr.msk.f32.mxu0 %vm728_vm1, %v676_v55 }
 0x1a0   : > { %v716_v62 = vpop.permute.xlu1 %715 }
 0x1a1   : > { %1280 = vmatmul.mubr.msk.f32.gmra.mrb[4].mxu0 %vm728_vm1, %v677_v56 }
 0x1a2   : > { %1282 = vmatprep.mubr.msk.f32.mxu0 %vm728_vm1, %v678_v57 }
 0x1a4   : > { %v726_v6 = vpop.permute.xlu1 %725 }
 0x1a5   : > { %1283 = vmatmul.mubr.msk.f32.gmra.mrb[6].mxu0 %vm728_vm1, %v679_v58 }
 0x1a8   : > { %v696_v16 = vpop.permute.xlu1 %695 }
 0x1ac   : > { %v706_v30 = vpop.permute.xlu1 %705 }
 0x26c   : > { %v1275_v61 = vpop.f32.mrb[0].mxu0 }
 0x26d   : > { %v819_v63 = vpop.f32.mrb[1].mxu0  ;;  %v825_v28 = vadd.f32 %v1275_v61, %v696_v16  ;;  %v918_v61 = vpop.permute.xlu1 %917 }
 0x26e   : > { %v820_v29 = vadd.f32 %v819_v63, %v691_v22  ;;  %v913_v63 = vpop.permute.xlu0 %912 }
 0x26f   : > { %v867_v32 = vsel %vm863_vm3, %v825_v28, 0.0 }
 0x270   : > { %v1278_v3 = vpop.f32.mrb[2].mxu0  ;;  %v866_v34 = vsel %vm863_vm3, %v820_v29, 0.0 }
 0x271   : > { %v829_v4 = vpop.f32.mrb[3].mxu0  ;;  %v835_v33 = vadd.f32 %v1278_v3, %v706_v30 }
 0x272   : > { %v830_v35 = vadd.f32 %v829_v4, %v701_v31 }
 0x273   : > { %v869_v39 = vsel %vm863_vm3, %v835_v33, 0.0 }
 0x274   : > { %v1281_v7 = vpop.f32.mrb[4].mxu0  ;;  %v868_v41 = vsel %vm863_vm3, %v830_v35, 0.0 }
 0x275   : > { %v845_v8 = vadd.f32 %v1281_v7, %v716_v62  ;;  %v839_v9 = vpop.f32.mrb[5].mxu0 }
 0x276   : > { %v840_v11 = vadd.f32 %v839_v9, %v711_v2 }
 0x277   : > { %v871_v12 = vsel %vm863_vm3, %v845_v8, 0.0 }
 0x278   : > { %v1212_v13 = vmul.f32 -1.442695, %v871_v12  ;;  %v870_v14 = vsel %vm863_vm3, %v840_v11, 0.0  ;;  %v1284_v15 = vpop.f32.mrb[6].mxu0 }
 0x279   : > { %v1211_v17 = vmul.f32 -1.442695, %v870_v14  ;;  %v855_v18 = vadd.f32 %v1284_v15, %v726_v6  ;;  %v849_v19 = vpop.f32.mrb[7].mxu0 }
 0x27a   : > { %1429 = vpow2.f32 %v1212_v13  ;;  %v850_v20 = vadd.f32 %v849_v19, %v721_v10 }
 0x27b   : > { %1431 = vpow2.f32 %v1211_v17  ;;  %v873_v21 = vsel %vm863_vm3, %v855_v18, 0.0 }
 0x27c   : > { %v1214_v23 = vmul.f32 -1.442695, %v873_v21  ;;  %v872_v24 = vsel %vm863_vm3, %v850_v20, 0.0 }
 0x27d   : > { %v1213_v25 = vmul.f32 -1.442695, %v872_v24 }
 0x27e   : > { %1433 = vpow2.f32 %v1214_v23 }
 0x27f   : > { %1435 = vpow2.f32 %v1213_v25 }
 0x280   : > { %1437 = vtanh.f32 %v867_v32 }
 0x281   : > { %1439 = vtanh.f32 %v866_v34 }
 0x284   : > { %v1430_v36 = vpop.eup %1429 }
 0x285   : > { %v1432_v37 = vpop.eup %1431  ;;  %v891_v38 = vadd.f32 1.0, %v1430_v36 }
 0x286   : > { %v890_v40 = vadd.f32 1.0, %v1432_v37 }
 0x287   : > { %1441 = vrcp.f32 %v891_v38 }
 0x288   : > { %v1434_v42 = vpop.eup %1433  ;;  %1443 = vrcp.f32 %v890_v40 }
 0x289   : > { %v1436_v43 = vpop.eup %1435  ;;  %1445 = vtanh.f32 %v869_v39  ;;  %v893_v44 = vadd.f32 1.0, %v1434_v42 }
 0x28a   : > { %1447 = vtanh.f32 %v868_v41  ;;  %v892_v45 = vadd.f32 1.0, %v1436_v43  ;;  %v1438_v46 = vpop.eup %1437 }
 0x28b   : > { %1449 = vrcp.f32 %v893_v44  ;;  %v1440_v47 = vpop.eup %1439 }
 0x28c   : > { %1451 = vrcp.f32 %v892_v45 }
 0x291   : > { %v1442_v48 = vpop.eup %1441 }
 0x292   : > { %v1444_v49 = vpop.eup %1443  ;;  %v903_v50 = vmul.f32 %v1442_v48, %v1438_v46 }
 0x293   : > { %v1446_v51 = vpop.eup %1445  ;;  %v902_v52 = vmul.f32 %v1444_v49, %v1440_v47 }
 0x294   : > { %v1448_v53 = vpop.eup %1447 }
 0x295   : > { %v1450_v54 = vpop.eup %1449  ;;  %v1312_v55 = vpack.c.bf16 %v903_v50, %v902_v52 }
 0x296   : > { %v1452_v56 = vpop.eup %1451  ;;  %v905_v57 = vmul.f32 %v1450_v54, %v1446_v51 }
 0x297   : > { %1313 = vmatprep.subr.bf16.mxu1 %v1312_v55  ;;  %v904_v58 = vmul.f32 %v1452_v56, %v1448_v53 }
 0x298   : > { %1315 = vmatpush3.bf16.msra.mxu1 %v1312_v55 }
 0x299   : > { %v1316_v59 = vpack.c.bf16 %v905_v57, %v904_v58 }
 0x29b   : > { %1317 = vmatprep.subr.bf16.mxu1 %v1316_v59 }
 0x29c   : > { %1319 = vmatpush3.bf16.msra.mxu1 %v1316_v59 }
 0x29f   : > { %1294 = vmatmul.mubr.msk.f32.vlgmr.msra.gmra.mrb[4].mxu1 %vm728_vm1, %v907_v60 }
 0x372   : > { %v1295_v62 = vpop.f32.mrb[4].mxu1 }
 0x373   : > { %v998_v0 = vadd.f32 %v1295_v62, %v918_v61  ;;  %v992_v1 = vpop.f32.mrb[5].mxu1 }
 0x374   : > { %v993_v2 = vadd.f32 %v992_v1, %v913_v63 }
 0x375   : > { %v1002_v3 = vmax.f32 %v998_v0, 0.0 }
 0x376   : > { %v1001_v4 = vmax.f32 %v993_v2, 0.0 }
 0x377   : > { %v1004_v5 = vadd.f32 %v1002_v3, %v1818_v26  ;;  %1008 = vst [vmem:[%s470_s28 + $0x8] sm:$0xff] %v1002_v3 }
 0x378   : > { %v1003_v6 = vadd.f32 %v1001_v4, %v1820_v27  ;;  %1007 = vst [vmem:[%s470_s28] sm:$0xff] %v1001_v4 }
 0x379   : > { %1006 = vst [vmem:[%s1894_s22 + $0x8] sm:$0xff] %v1004_v5 }
 0x37a   : > { %1466 = shalt.err (!%p1463_p11)
}
 0x37b   : > { %s1467_s28 = scalar_lea.hbm %s1902_s16, 256  ;;  %s1471_s13 = scalar_lea.hbm %s2012_s9, 1024 }
 0x37c   : > { %p1468_p12 = scmp.ne.s32.totalorder %s1902_s16, %s1467_s28  ;;  %p1472_p2 = scmp.lt.u32.totalorder %s1902_s16, %s2012_s9 }
 0x37d   : > { %p1473_p3 = scmp.lt.u32.totalorder %s1471_s13, %s1467_s28  ;;  %p1475_p5 = scmp.lt.u32.totalorder %s1467_s28, %s1902_s16 }
 0x37e   : > { %p1469_p0 = pnand %p1468_p12, %p1748_p9 }
 0x37f   : > { %p1474_p4 = por %p1473_p3, %p1472_p2 }
 0x380   : > { %p1470_p1 = pneg %p1469_p0 }
 0x381   : > { %p1476_p6 = por %p1475_p5, %p1474_p4 }
 0x383   : > { %p1477_p7 = pnand %p1476_p6, %p1470_p1 }
 0x385   : > { %1480 = shalt.err (!%p1477_p7)
}
 0x386   : > { %s1603_s19 = smov 128   ;;  %s1604_s15 = smov 256   ;;  %1005 = vst [vmem:[%s1894_s22] sm:$0xff] %v1003_v6 }
 0x387   : > { %s1605_s29 = smov 8   ;;  %s1010_s28 = scalar_lea.sflag [#allocation5], %s1780_s21 }
 0x388   : > { %1321 = dma.vmem_to_hbm [thread:$0]  (%p1748_p9), %s1897_s10, 256, %s1902_s16, %s1015_s25, %s1603_s19, %s1604_s15, %s1605_s29  }
 0x389   : > { %s1481_s27 = scalar_lea.vmem %s1905_s24, 256  ;;  %s1606_s13 = smov [#allocation4]  }
 0x38a   : > { %p1482_p8 = scmp.ne.s32.totalorder %s1905_s24, %s1481_s27  ;;  %s1485_s23 = sshll.u32 %s1606_s13, 4  ;;  %s1486_s23 = int_to_ptr.vmem [resolvable:$false] %s1485_s23 }
 0x38b   : > { %s1487_s14 = scalar_lea.vmem %s1486_s23, 512  ;;  %p1488_p12 = scmp.lt.s32.totalorder %s1905_s24, %s1486_s23 }
 0x38c   : > { %p1483_p10 = pnand %p1482_p8, %p1748_p9  ;;  %p1489_p0 = scmp.lt.s32.totalorder %s1487_s14, %s1481_s27 }
 0x38e   : > { %p1484_p11 = pneg %p1483_p10  ;;  %p1490_p1 = por %p1489_p0, %p1488_p12 }
 0x390   : > { %p1491_p2 = pnand %p1490_p1, %p1484_p11 }
 0x392   : > { %1494 = shalt.err (!%p1491_p2)
}
 0x393   : > { %s1495_s10 = scalar_lea.hbm %s1911_s26, 256  ;;  %s1499_s25 = scalar_lea.hbm %s2031_s20, 1024 }
 0x394   : > { %p1496_p3 = scmp.ne.s32.totalorder %s1911_s26, %s1495_s10  ;;  %p1500_p6 = scmp.lt.u32.totalorder %s1911_s26, %s2031_s20 }
 0x395   : > { %p1501_p7 = scmp.lt.u32.totalorder %s1499_s25, %s1495_s10  ;;  %p1503_p10 = scmp.lt.u32.totalorder %s1495_s10, %s1911_s26 }
 0x396   : > { %p1497_p4 = pnand %p1496_p3, %p1748_p9 }
 0x397   : > { %p1502_p8 = por %p1501_p7, %p1500_p6 }
 0x398   : > { %p1498_p5 = pneg %p1497_p4 }
 0x399   : > { %p1504_p11 = por %p1503_p10, %p1502_p8 }
 0x39b   : > { %p1505_p12 = pnand %p1504_p11, %p1498_p5 }
 0x39d   : > { %1508 = shalt.err (!%p1505_p12)
}
 0x39e   : > { %1320 = dma.vmem_to_hbm [thread:$0]  (%p1748_p9), %s1905_s24, 256, %s1911_s26, %s1010_s28, %s1603_s19, %s1604_s15, %s1605_s29  }
 0x39f PF: > { %p1331_p0 = scmp.ge.s32.totalorder %s1598_s18, 2  ;;  %s1061_s14 = sand.u32 1, %s1562_s30  }
 0x3a0   : > { %s1062_s10 = scalar_lea.sflag [#allocation5], %s1061_s14 }
 0x3a1   : > { %p1325_p1 = pnand %p1331_p0, %p1757_p13 }
 0x3a3   : > { %1550 = dma.done.wait (!%p1325_p1), %s1062_s10, 256  }
 0x3a4   : > { %1552 = vsyncadd (!%p1325_p1), %s1062_s10, 4294967040  ;;  %s1071_s8 = scalar_lea.sflag [#allocation7], %s1061_s14 }
 0x3a5   : > { %1554 = dma.done.wait (!%p1325_p1), %s1071_s8, 256  }
 0x3a6   : > { %1556 = vsyncadd (!%p1325_p1), %s1071_s8, 4294967040  ;;  %s26_s18 = sadd.s32 1, %s1598_s18   ;;  %s2033_s21 = sld [smem:[#allocation15_spill]] }
 0x3a7   : > { %p23_p2 = scmp.ge.s32.totalorder %s26_s18, 6   ;;  %s2034_s24 = sld [smem:[#allocation10_spill]] }
 0x3a8   : > { %s2035_s13 = sld [smem:[#allocation14_spill]]  ;;  %s2036_s14 = sld [smem:[#allocation11_spill]] }
 0x3a9   : > { %s2037_s16 = sld [smem:[#allocation12_spill]]  ;;  %s2038_s26 = sld [smem:[#allocation13_spill]] }
 0x3aa   : > { %s2039_s30 = smov %s1574_s12  ;;  %s2040_s10 = smov %s1570_s11 }
 0x3ab   : > { %s2043_s15 = smov %s1594_s17  ;;  %25 = sbr.rel (!%p23_p2) target bundleno = 10 (0xa), region = 193 }
 0x3ac   : > { %s2041_s11 = smov %s2033_s21 }
 0x3ad   : > { %s2042_s12 = smov %s2034_s24 }
 0x3af   : > { %s2044_s17 = smov %s2038_s26 }
 0x3b2   :  { %1076 = vsyncpa [#allocation5], 1 }
 0x3b3   :  { %1078 = vsyncpa [#allocation5 + $0x1], 1 }
 0x3b4   :  { %1079 = vsyncpa [#allocation7], 1 }
 0x3b5   :  { %1081 = vsyncpa [#allocation7 + $0x1], 1 }

</bundles_post_ra>
